<compile_context>
chip_gen: v7x
topology: tpu7x:2x2x1
jax: 0.10.0
libtpu: 0.0.40
codegen_flags: <defaults>
</compile_context>

<pallas_src>
import jax
import jax.numpy as jnp
from jax.experimental import pallas as pl
from jax.experimental.pallas import tpu as pltpu


NEG_SLOPE = 0.01   # nn.LeakyReLU default negative_slope
SUBLANE = 8        # TPU sublane width (f32)
LANE = 128         # TPU lane width


def _leaky_relu(x):
    # max(x, a*x) == leaky_relu(x) for 0 < a < 1; cheaper than where(cmp, ., .)
    return jnp.maximum(x, NEG_SLOPE * x)


def _round_up(n, m):
    return ((n + m - 1) // m) * m


def _choose_tile_b(B, max_tile=1024):
    """Pick the batch tile.

    Small B: a single tile, rows rounded to a sublane multiple (Pallas masks
    the out-of-bounds rows of the last partial block).
    Large B: tiles as large as possible (amortize the ~0.35 us per-grid-step
    overhead) while keeping >= 2 tiles so both v7x TensorCores get work.
    """
    if B <= LANE:
        return _round_up(B, SUBLANE)
    n_tiles = max(2, pl.cdiv(B, max_tile))
    return min(max_tile, _round_up(pl.cdiv(B, n_tiles), LANE))


def fc_kernel(x_ref, w1_ref, b1_ref, w2_ref, b2_ref, w3_ref, b3_ref,
              w4_ref, b4_ref, o_ref):
    """One batch tile through the whole 4-layer MLP.

    Weights are bf16 (MXU-native); accumulation and biases are f32.
    x arrives as f32 and is cast to bf16 in-kernel. Weights/biases use
    constant index_maps so they stay resident in VMEM across all tiles.
    """
    bf16 = jnp.bfloat16
    x = x_ref[...].astype(bf16)                                     # (TB, dims_in)

    h = jnp.dot(x, w1_ref[...], preferred_element_type=jnp.float32) + b1_ref[...]
    h = _leaky_relu(h.astype(bf16))

    h = jnp.dot(h, w2_ref[...], preferred_element_type=jnp.float32) + b2_ref[...]
    h = _leaky_relu(h.astype(bf16))

    h = jnp.dot(h, w3_ref[...], preferred_element_type=jnp.float32) + b3_ref[...]
    h = _leaky_relu(h.astype(bf16))

    y = jnp.dot(h, w4_ref[...], preferred_element_type=jnp.float32) + b4_ref[...]
    o_ref[...] = y.astype(o_ref.dtype)                              # (TB, dims_out) f32


def prepare_params(params):
    """One-time operand prep: bf16 weights, f32 (1, out) biases.

    Do this ONCE (outside the per-call path) and reuse; it replaces ~8
    per-call elementwise XLA ops and the associated HBM traffic.
    """
    bf16 = jnp.bfloat16
    prepared = {}
    for i in range(1, 5):
        prepared[f"w{i}"] = params[f"w{i}"].astype(bf16)
        prepared[f"b{i}"] = params[f"b{i}"].astype(jnp.float32).reshape(1, -1)
    return prepared


def fully_connected(x, prepared, *, max_tile_b=1024):
    """x: [B, dims_in] float32. prepared: output of prepare_params.

    Returns [B, dims_out] float32.
    """
    B, dims_in = x.shape
    internal = prepared["w1"].shape[1]
    dims_out = prepared["w4"].shape[1]

    tb = _choose_tile_b(B, max_tile_b)
    grid = (pl.cdiv(B, tb),)

    # --- BlockSpecs: tile batch only; feature dims are full-array dims ------
    x_spec = pl.BlockSpec((tb, dims_in), lambda i: (i, 0))
    o_spec = pl.BlockSpec((tb, dims_out), lambda i: (i, 0))

    def resident(arr):
        shape = arr.shape
        return pl.BlockSpec(shape, lambda i: (0,) * len(shape))

    weight_keys = ("w1", "b1", "w2", "b2", "w3", "b3", "w4", "b4")
    in_specs = [x_spec] + [resident(prepared[k]) for k in weight_keys]

    flops = 2 * B * (dims_in * internal + 2 * internal * internal
                     + internal * dims_out)
    bytes_accessed = (
        x.size * x.dtype.itemsize
        + sum(prepared[k].size * prepared[k].dtype.itemsize for k in weight_keys)
        + B * dims_out * 4)

    return pl.pallas_call(
        fc_kernel,
        out_shape=jax.ShapeDtypeStruct((B, dims_out), jnp.float32),
        grid=grid,
        in_specs=in_specs,
        out_specs=o_spec,
        compiler_params=pltpu.CompilerParams(
            dimension_semantics=("parallel",),   # batch tiles across v7x's 2 TCs
        ),
        cost_estimate=pl.CostEstimate(
            flops=flops, transcendentals=0, bytes_accessed=bytes_accessed),
    )(x, *(prepared[k] for k in weight_keys))


def init_params(key, dims_in, dims_out, internal_size=128):
    """Deterministic synthetic init (PyTorch-Linear-like uniform scaling)."""
    keys = jax.random.split(key, 8)
    dims = [(dims_in, internal_size),
            (internal_size, internal_size),
            (internal_size, internal_size),
            (internal_size, dims_out)]
    params = {}
    for i, (din, dout) in enumerate(dims, start=1):
        bound = 1.0 / jnp.sqrt(din)
        # stored as [in, out] (transpose of torch's [out, in]); same math.
        params[f"w{i}"] = jax.random.uniform(
            keys[2 * (i - 1)], (din, dout), jnp.float32, -bound, bound)
        params[f"b{i}"] = jax.random.uniform(
            keys[2 * (i - 1) + 1], (1, dout), jnp.float32, -bound, bound)
    return params


def fully_connected_ref(x, prepared):
    """Plain-JAX reference mirroring the kernel's bf16-operand / f32-accum math."""
    bf16 = jnp.bfloat16

    def layer(h, w, b, act):
        y = jnp.dot(h.astype(bf16), w, preferred_element_type=jnp.float32) + b
        if act:
            y = _leaky_relu(y.astype(bf16))
        return y

    h = layer(x, prepared["w1"], prepared["b1"], True)
    h = layer(h, prepared["w2"], prepared["b2"], True)
    h = layer(h, prepared["w3"], prepared["b3"], True)
    return layer(h, prepared["w4"], prepared["b4"], False)


if __name__ == "__main__":
    key = jax.random.PRNGKey(0)
    k_x, k_p = jax.random.split(key)

    B, dims_in, dims_out, internal = 8, 32, 16, 128
    x = jax.random.normal(k_x, (B, dims_in), jnp.float32)
    params = init_params(k_p, dims_in, dims_out, internal)
    prepared = prepare_params(params)          # one-time bf16 weight prep

    out = fully_connected(x, prepared)
    out = jax.block_until_ready(out)

    ref = fully_connected_ref(x, prepared)
    assert out.shape == (B, dims_out)
    assert jnp.allclose(out, ref, atol=2e-2, rtol=2e-2), (
        float(jnp.max(jnp.abs(out - ref))))

    print("KERNEL_OK")
</pallas_src>

<mosaic_0001>
module attributes {stable_mosaic.version = 11 : i64} {
  func.func @fc_kernel(%arg0: i32, %arg1: memref<8x32xf32, #tpu.memory_space<vmem>>, %arg2: memref<32x128xbf16, #tpu.memory_space<vmem>>, %arg3: memref<1x128xf32, #tpu.memory_space<vmem>>, %arg4: memref<128x128xbf16, #tpu.memory_space<vmem>>, %arg5: memref<1x128xf32, #tpu.memory_space<vmem>>, %arg6: memref<128x128xbf16, #tpu.memory_space<vmem>>, %arg7: memref<1x128xf32, #tpu.memory_space<vmem>>, %arg8: memref<128x16xbf16, #tpu.memory_space<vmem>>, %arg9: memref<1x16xf32, #tpu.memory_space<vmem>>, %arg10: memref<8x16xf32, #tpu.memory_space<vmem>>) attributes {dimension_semantics = [#tpu.dimension_semantics<parallel>], iteration_bounds = array<i64: 1>, scalar_prefetch = 0 : i64, scratch_operands = 0 : i64, tpu.core_type = #tpu.core_type<tc>, window_params = [{transform_indices = @transform_0, window_bounds = array<i64: 8, 32>}, {pipeline_mode = #tpu.pipeline_mode<synchronous>, transform_indices = @transform_1, window_bounds = array<i64: 32, 128>}, {pipeline_mode = #tpu.pipeline_mode<synchronous>, transform_indices = @transform_2, window_bounds = array<i64: 1, 128>}, {pipeline_mode = #tpu.pipeline_mode<synchronous>, transform_indices = @transform_3, window_bounds = array<i64: 128, 128>}, {pipeline_mode = #tpu.pipeline_mode<synchronous>, transform_indices = @transform_4, window_bounds = array<i64: 1, 128>}, {pipeline_mode = #tpu.pipeline_mode<synchronous>, transform_indices = @transform_5, window_bounds = array<i64: 128, 128>}, {pipeline_mode = #tpu.pipeline_mode<synchronous>, transform_indices = @transform_6, window_bounds = array<i64: 1, 128>}, {pipeline_mode = #tpu.pipeline_mode<synchronous>, transform_indices = @transform_7, window_bounds = array<i64: 128, 16>}, {pipeline_mode = #tpu.pipeline_mode<synchronous>, transform_indices = @transform_8, window_bounds = array<i64: 1, 16>}, {transform_indices = @transform_9, window_bounds = array<i64: 8, 16>}]} {
    %c0 = arith.constant 0 : index
    %c0_0 = arith.constant 0 : index
    %0 = vector.load %arg1[%c0, %c0_0] : memref<8x32xf32, #tpu.memory_space<vmem>>, vector<8x32xf32>
    %1 = arith.truncf %0 : vector<8x32xf32> to vector<8x32xbf16>
    %c0_1 = arith.constant 0 : index
    %c0_2 = arith.constant 0 : index
    %2 = vector.load %arg2[%c0_1, %c0_2] : memref<32x128xbf16, #tpu.memory_space<vmem>>, vector<32x128xbf16>
    %cst = arith.constant dense<0.000000e+00> : vector<8x128xf32>
    %3 = tpu.matmul %1, %2, %cst {dimension_numbers = #tpu.dot_dimension_numbers<[1], [0], [0], [1], [0, 0, 1, 1], [], []>} : vector<8x32xbf16>, vector<32x128xbf16>, vector<8x128xf32> -> vector<8x128xf32>
    %c0_3 = arith.constant 0 : index
    %c0_4 = arith.constant 0 : index
    %4 = vector.load %arg3[%c0_3, %c0_4] : memref<1x128xf32, #tpu.memory_space<vmem>>, vector<1x128xf32>
    %5 = vector.broadcast %4 : vector<1x128xf32> to vector<8x128xf32>
    %6 = arith.addf %3, %5 : vector<8x128xf32>
    %7 = arith.truncf %6 : vector<8x128xf32> to vector<8x128xbf16>
    %cst_5 = arith.constant 1.000980e-02 : bf16
    %8 = vector.broadcast %cst_5 : bf16 to vector<8x128xbf16>
    %9 = arith.mulf %8, %7 : vector<8x128xbf16>
    %10 = arith.maximumf %7, %9 : vector<8x128xbf16>
    %c0_6 = arith.constant 0 : index
    %c0_7 = arith.constant 0 : index
    %11 = vector.load %arg4[%c0_6, %c0_7] : memref<128x128xbf16, #tpu.memory_space<vmem>>, vector<128x128xbf16>
    %cst_8 = arith.constant dense<0.000000e+00> : vector<8x128xf32>
    %12 = tpu.matmul %10, %11, %cst_8 {dimension_numbers = #tpu.dot_dimension_numbers<[1], [0], [0], [1], [0, 0, 1, 1], [], []>} : vector<8x128xbf16>, vector<128x128xbf16>, vector<8x128xf32> -> vector<8x128xf32>
    %c0_9 = arith.constant 0 : index
    %c0_10 = arith.constant 0 : index
    %13 = vector.load %arg5[%c0_9, %c0_10] : memref<1x128xf32, #tpu.memory_space<vmem>>, vector<1x128xf32>
    %14 = vector.broadcast %13 : vector<1x128xf32> to vector<8x128xf32>
    %15 = arith.addf %12, %14 : vector<8x128xf32>
    %16 = arith.truncf %15 : vector<8x128xf32> to vector<8x128xbf16>
    %cst_11 = arith.constant 1.000980e-02 : bf16
    %17 = vector.broadcast %cst_11 : bf16 to vector<8x128xbf16>
    %18 = arith.mulf %17, %16 : vector<8x128xbf16>
    %19 = arith.maximumf %16, %18 : vector<8x128xbf16>
    %c0_12 = arith.constant 0 : index
    %c0_13 = arith.constant 0 : index
    %20 = vector.load %arg6[%c0_12, %c0_13] : memref<128x128xbf16, #tpu.memory_space<vmem>>, vector<128x128xbf16>
    %cst_14 = arith.constant dense<0.000000e+00> : vector<8x128xf32>
    %21 = tpu.matmul %19, %20, %cst_14 {dimension_numbers = #tpu.dot_dimension_numbers<[1], [0], [0], [1], [0, 0, 1, 1], [], []>} : vector<8x128xbf16>, vector<128x128xbf16>, vector<8x128xf32> -> vector<8x128xf32>
    %c0_15 = arith.constant 0 : index
    %c0_16 = arith.constant 0 : index
    %22 = vector.load %arg7[%c0_15, %c0_16] : memref<1x128xf32, #tpu.memory_space<vmem>>, vector<1x128xf32>
    %23 = vector.broadcast %22 : vector<1x128xf32> to vector<8x128xf32>
    %24 = arith.addf %21, %23 : vector<8x128xf32>
    %25 = arith.truncf %24 : vector<8x128xf32> to vector<8x128xbf16>
    %cst_17 = arith.constant 1.000980e-02 : bf16
    %26 = vector.broadcast %cst_17 : bf16 to vector<8x128xbf16>
    %27 = arith.mulf %26, %25 : vector<8x128xbf16>
    %28 = arith.maximumf %25, %27 : vector<8x128xbf16>
    %c0_18 = arith.constant 0 : index
    %c0_19 = arith.constant 0 : index
    %29 = vector.load %arg8[%c0_18, %c0_19] : memref<128x16xbf16, #tpu.memory_space<vmem>>, vector<128x16xbf16>
    %cst_20 = arith.constant dense<0.000000e+00> : vector<8x16xf32>
    %30 = tpu.matmul %28, %29, %cst_20 {dimension_numbers = #tpu.dot_dimension_numbers<[1], [0], [0], [1], [0, 0, 1, 1], [], []>} : vector<8x128xbf16>, vector<128x16xbf16>, vector<8x16xf32> -> vector<8x16xf32>
    %c0_21 = arith.constant 0 : index
    %c0_22 = arith.constant 0 : index
    %31 = vector.load %arg9[%c0_21, %c0_22] : memref<1x16xf32, #tpu.memory_space<vmem>>, vector<1x16xf32>
    %32 = vector.broadcast %31 : vector<1x16xf32> to vector<8x16xf32>
    %33 = arith.addf %30, %32 : vector<8x16xf32>
    %c0_23 = arith.constant 0 : index
    %c0_24 = arith.constant 0 : index
    %34 = vector.load %arg10[%c0_23, %c0_24] : memref<8x16xf32, #tpu.memory_space<vmem>>, vector<8x16xf32>
    tpu.vector_store %arg10[%c0_23, %c0_24], %33 {strides = array<i32>} : memref<8x16xf32, #tpu.memory_space<vmem>>, vector<8x16xf32>,
    return
  }
  func.func @transform_0(%arg0: i32) -> (i32, i32) {
    %c0_i32 = arith.constant 0 : i32
    %c0_i32_0 = arith.constant 0 : i32
    return %arg0, %c0_i32 : i32, i32
  }
  func.func @transform_1(%arg0: i32) -> (i32, i32) {
    %c0_i32 = arith.constant 0 : i32
    %c0_i32_0 = arith.constant 0 : i32
    %c0_i32_1 = arith.constant 0 : i32
    return %c0_i32, %c0_i32_0 : i32, i32
  }
  func.func @transform_2(%arg0: i32) -> (i32, i32) {
    %c0_i32 = arith.constant 0 : i32
    %c0_i32_0 = arith.constant 0 : i32
    %c0_i32_1 = arith.constant 0 : i32
    return %c0_i32, %c0_i32_0 : i32, i32
  }
  func.func @transform_3(%arg0: i32) -> (i32, i32) {
    %c0_i32 = arith.constant 0 : i32
    %c0_i32_0 = arith.constant 0 : i32
    %c0_i32_1 = arith.constant 0 : i32
    return %c0_i32, %c0_i32_0 : i32, i32
  }
  func.func @transform_4(%arg0: i32) -> (i32, i32) {
    %c0_i32 = arith.constant 0 : i32
    %c0_i32_0 = arith.constant 0 : i32
    %c0_i32_1 = arith.constant 0 : i32
    return %c0_i32, %c0_i32_0 : i32, i32
  }
  func.func @transform_5(%arg0: i32) -> (i32, i32) {
    %c0_i32 = arith.constant 0 : i32
    %c0_i32_0 = arith.constant 0 : i32
    %c0_i32_1 = arith.constant 0 : i32
    return %c0_i32, %c0_i32_0 : i32, i32
  }
  func.func @transform_6(%arg0: i32) -> (i32, i32) {
    %c0_i32 = arith.constant 0 : i32
    %c0_i32_0 = arith.constant 0 : i32
    %c0_i32_1 = arith.constant 0 : i32
    return %c0_i32, %c0_i32_0 : i32, i32
  }
  func.func @transform_7(%arg0: i32) -> (i32, i32) {
    %c0_i32 = arith.constant 0 : i32
    %c0_i32_0 = arith.constant 0 : i32
    %c0_i32_1 = arith.constant 0 : i32
    return %c0_i32, %c0_i32_0 : i32, i32
  }
  func.func @transform_8(%arg0: i32) -> (i32, i32) {
    %c0_i32 = arith.constant 0 : i32
    %c0_i32_0 = arith.constant 0 : i32
    %c0_i32_1 = arith.constant 0 : i32
    return %c0_i32, %c0_i32_0 : i32, i32
  }
  func.func @transform_9(%arg0: i32) -> (i32, i32) {
    %c0_i32 = arith.constant 0 : i32
    %c0_i32_0 = arith.constant 0 : i32
    return %arg0, %c0_i32 : i32, i32
  }
}

</mosaic_0001>

<bundles_post_ra>
// kernel: tpu_custom_call.1
= control target key start
LH: loop header
LB: loop body
LE: loop exit
PB: predicated region body
PF: predicated region fallthrough
CT: control target
= control target key end

     0   :  { %14 = vsyncpa [#allocation3], 0  ;;  %s924_s0 = inlined_call_operand.hbm [shape: f32[8,32], index: 0, kind: input, shape index: {}]   ;;  %s925_s1 = inlined_call_operand.vmem [shape: bf16[32,128], index: 1, kind: input, shape index: {}]   ;;  %s926_s2 = inlined_call_operand.vmem [shape: f32[1,128], index: 2, kind: input, shape index: {}]   ;;  %s927_s3 = inlined_call_operand.vmem [shape: bf16[128,128], index: 3, kind: input, shape index: {}]   ;;  %s928_s4 = inlined_call_operand.vmem [shape: f32[1,128], index: 4, kind: input, shape index: {}]   ;;  %s929_s5 = inlined_call_operand.hbm [shape: bf16[128,128], index: 5, kind: input, shape index: {}]   ;;  %s930_s6 = inlined_call_operand.vmem [shape: f32[1,128], index: 6, kind: input, shape index: {}]   ;;  %s931_s7 = inlined_call_operand.vmem [shape: bf16[128,16], index: 7, kind: input, shape index: {}]   ;;  %s932_s8 = inlined_call_operand.vmem [shape: f32[1,16], index: 8, kind: input, shape index: {}]   ;;  %s933_s9 = inlined_call_operand.hbm [shape: f32[8,16], index: 9, kind: output, shape index: {}]  }
   0x1   :  { %15 = vsyncpa [#allocation6], 0 }
   0x2   :  { %16 = vsyncpa [#allocation4], 0  ;;  %s724_s30 = smov [#allocation2]   ;;  %s725_s11 = smov [#allocation5]  }
   0x3   :  { %s23_s10 = sshll.u32 %s724_s30, 4  ;;  %s40_s12 = sshll.u32 %s725_s11, 4  ;;  %s24_s10 = int_to_ptr.vmem [resolvable:$true] %s23_s10  ;;  %s781_s12 = int_to_ptr.vmem [resolvable:$true] %s40_s12 }
   0x4   :  { %s652_s15 = scalar_lea.hbm %s924_s0, 128 }
   0x5   :  { %p653_p0 = scmp.ne.s32.totalorder %s924_s0, %s652_s15  ;;  %p656_p1 = scmp.lt.u32.totalorder %s652_s15, %s924_s0 }
   0x7   :  { %p658_p2 = pnand %p656_p1, %p653_p0 }
   0x9   :  { %661 = shalt.err (!%p658_p2)
}
   0xa   :  { %s662_s20 = scalar_lea.vmem %s24_s10, 128  ;;  %p667_p4 = scmp.lt.s32.totalorder %s24_s10, %s24_s10 }
   0xb   :  { %p663_p3 = scmp.ne.s32.totalorder %s24_s10, %s662_s20  ;;  %p668_p5 = scmp.lt.s32.totalorder %s662_s20, %s662_s20 }
   0xd   :  { %p669_p6 = por %p668_p5, %p667_p4 }
   0xf   :  { %p670_p7 = pnand %p669_p6, %p663_p3 }
  0x11   :  { %673 = shalt.err (!%p670_p7)
}
  0x12   :  { %26 = dma.hbm_to_vmem [thread:$0]  %s924_s0, 128, %s24_s10, [#allocation3]  }
  0x13   :  { %s674_s25 = scalar_lea.hbm %s929_s5, 1024 }
  0x14   :  { %p675_p8 = scmp.ne.s32.totalorder %s929_s5, %s674_s25  ;;  %p678_p9 = scmp.lt.u32.totalorder %s674_s25, %s929_s5 }
  0x16   :  { %p680_p10 = pnand %p678_p9, %p675_p8 }
  0x18   :  { %683 = shalt.err (!%p680_p10)
}
  0x19   :  { %s684_s30 = scalar_lea.vmem %s781_s12, 1024  ;;  %p689_p12 = scmp.lt.s32.totalorder %s781_s12, %s781_s12 }
  0x1a   :  { %p685_p11 = scmp.ne.s32.totalorder %s781_s12, %s684_s30  ;;  %p690_p13 = scmp.lt.s32.totalorder %s684_s30, %s684_s30 }
  0x1c   :  { %p691_p0 = por %p690_p13, %p689_p12 }
  0x1e   :  { %p692_p1 = pnand %p691_p0, %p685_p11 }
  0x20   :  { %695 = shalt.err (!%p692_p1)
}
  0x21   :  { %s726_s0 = smov 64   ;;  %s727_s10 = smov 4  }
  0x22   :  { %46 = dma.hbm_to_vmem [thread:$0]  %s929_s5, 1024, %s781_s12, [#allocation6], %s726_s0, %s726_s0, %s727_s10  }
  0x23   :  { %718 = dma.done.wait [#allocation3], 128  }
  0x24   :  { %719 = vsyncadd [#allocation3], 4294967168 }
  0x25   :  { %720 = dma.done.wait [#allocation6], 1024  }
  0x26   :  { %721 = vsyncadd [#allocation6], 4294966272  ;;  %v728_v0 = vmov 0.0   ;;  %vm729_vm0 = vmmov 0   ;;  %v626_v1 = vld [vmem:[%s925_s1] sm:$0xff]   ;;  %v627_v2 = vld [vmem:[%s925_s1 + $0x8] sm:$0xff]  }
  0x27   :  { %551 = vmatprep.subr.bf16.mxu0 %v728_v0  ;;  %555 = vmatprep.mubr.msk.bf16.mxu0 %vm729_vm0, %v728_v0  ;;  %v61_v3 = vld [vmem:[#allocation2] sm:$0xff]  ;;  %v629_v6 = vld [vmem:[%s927_s3 + $0x8] sm:$0xff]   ;;  %vm86_vm1 = vcmask 261120   ;;  %v630_v7 = vld [vmem:[%s927_s3 + $0x10] sm:$0xff]   ;;  %s730_s28 = smov [#allocation7]   ;;  %vm472_vm2 = vcmask 130048  }
  0x28   :  { %559 = vmatprep.subr.bf16.mxu1 %v728_v0  ;;  %575 = vmatprep.mubr.msk.bf16.mxu1 %vm729_vm0, %v728_v0  ;;  %v628_v4 = vld [vmem:[%s927_s3] sm:$0xff]   ;;  %v62_v5 = vpack.c.bf16 %v61_v3, %v61_v3  ;;  %v631_v8 = vld [vmem:[%s927_s3 + $0x18] sm:$0xff]   ;;  %v633_v10 = vld [vmem:[%s927_s3 + $0x28] sm:$0xff]  }
  0x29   :  { %552 = vmatpush3.bf16.msra.mxu0 %v626_v1  ;;  %560 = vmatpush3.bf16.msra.mxu1 %v628_v4  ;;  %v632_v9 = vld [vmem:[%s927_s3 + $0x20] sm:$0xff]   ;;  %v634_v11 = vld [vmem:[%s927_s3 + $0x30] sm:$0xff]   ;;  %v635_v12 = vld [vmem:[%s927_s3 + $0x38] sm:$0xff]  }
  0x2a   :  { %553 = vmatprep.subr.bf16.mxu0 %v728_v0  ;;  %561 = vmatprep.subr.bf16.mxu1 %v728_v0  ;;  %v636_v13 = vld [vmem:[#allocation5] sm:$0xff]   ;;  %v637_v14 = vld [vmem:[#allocation5 + $0x8] sm:$0xff]   ;;  %v638_v15 = vld [vmem:[#allocation5 + $0x10] sm:$0xff]  }
  0x2b   :  { %v639_v16 = vld [vmem:[#allocation5 + $0x18] sm:$0xff]   ;;  %v640_v17 = vld [vmem:[#allocation5 + $0x20] sm:$0xff]   ;;  %v641_v18 = vld [vmem:[#allocation5 + $0x28] sm:$0xff]  }
  0x2c   :  { %v490_v19 = vld [vmem:[%s926_s2] ss:$0 sm:$0xff]  ;;  %v642_v28 = vld [vmem:[#allocation5 + $0x30] sm:$0xff]   ;;  %v645_v31 = vld [vmem:[%s931_s7 + $0x8] sm:$0xff]  }
  0x2d   :  { %554 = vmatpush3.bf16.msra.mxu0 %v627_v2  ;;  %562 = vmatpush3.bf16.msra.mxu1 %v629_v6  ;;  %v643_v29 = vld [vmem:[#allocation5 + $0x38] sm:$0xff]   ;;  %v646_v32 = vld [vmem:[%s931_s7 + $0x10] sm:$0xff]   ;;  %v647_v33 = vld [vmem:[%s931_s7 + $0x18] sm:$0xff]  }
  0x2e   :  { %579 = vmatprep.subr.bf16.mxu0 %v728_v0  ;;  %563 = vmatprep.subr.bf16.mxu1 %v728_v0  ;;  %v644_v30 = vld [vmem:[%s931_s7] sm:$0xff]   ;;  %v649_v35 = vld [vmem:[%s931_s7 + $0x28] sm:$0xff]   ;;  %v650_v45 = vld [vmem:[%s931_s7 + $0x30] sm:$0xff]  }
  0x2f   :  { %v648_v34 = vld [vmem:[%s931_s7 + $0x20] sm:$0xff]   ;;  %v651_v46 = vld [vmem:[%s931_s7 + $0x38] sm:$0xff]   ;;  %s480_s7 = sshll.u32 %s730_s28, 4  ;;  %s481_s7 = int_to_ptr.vmem [resolvable:$true] %s480_s7 }
  0x30   :  { %556 = vmatmul.mubr.msk.bf16.vlgmr.msra.gmra.mrb[0].mxu0 %vm86_vm1, %v62_v5  ;;  %v494_v36 = vld [vmem:[%s928_s4] ss:$0 sm:$0xff]  ;;  %p701_p3 = scmp.lt.s32.totalorder %s481_s7, %s481_s7 }
  0x31   :  { %595 = vmatprep.mubr.msk.bf16.mxu0 %vm729_vm0, %v728_v0  ;;  %564 = vmatpush3.bf16.msra.mxu1 %v630_v7  ;;  %v503_v47 = vld [vmem:[%s930_s6] ss:$0 sm:$0xff]  ;;  %s696_s6 = scalar_lea.vmem %s481_s7, 128 }
  0x32   :  { %565 = vmatprep.subr.bf16.mxu1 %v728_v0  ;;  %580 = vmatpush3.bf16.msra.mxu0 %v636_v13  ;;  %v512_v56 = vld [vmem:[%s932_s8] ss:$0 sm:$0xff]  ;;  %p697_p2 = scmp.ne.s32.totalorder %s481_s7, %s696_s6  ;;  %p702_p4 = scmp.lt.s32.totalorder %s696_s6, %s696_s6 }
  0x33   :  { %581 = vmatprep.subr.bf16.mxu0 %v728_v0 }
  0x34   :  { %p703_p5 = por %p702_p4, %p701_p3 }
  0x35   :  { %566 = vmatpush3.bf16.msra.mxu1 %v631_v8 }
  0x36   :  { %567 = vmatprep.subr.bf16.mxu1 %v728_v0  ;;  %582 = vmatpush3.bf16.msra.mxu0 %v637_v14  ;;  %p704_p6 = pnand %p703_p5, %p697_p2 }
  0x37   :  { %583 = vmatprep.subr.bf16.mxu0 %v728_v0 }
  0x39   :  { %568 = vmatpush3.bf16.msra.mxu1 %v632_v9 }
  0x3a   :  { %569 = vmatprep.subr.bf16.mxu1 %v728_v0  ;;  %584 = vmatpush3.bf16.msra.mxu0 %v638_v15 }
  0x3b   :  { %585 = vmatprep.subr.bf16.mxu0 %v728_v0 }
  0x3d   :  { %570 = vmatpush3.bf16.msra.mxu1 %v633_v10 }
  0x3e   :  { %571 = vmatprep.subr.bf16.mxu1 %v728_v0  ;;  %586 = vmatpush3.bf16.msra.mxu0 %v639_v16 }
  0x3f   :  { %587 = vmatprep.subr.bf16.mxu0 %v728_v0 }
  0x41   :  { %572 = vmatpush3.bf16.msra.mxu1 %v634_v11 }
  0x42   :  { %573 = vmatprep.subr.bf16.mxu1 %v728_v0  ;;  %588 = vmatpush3.bf16.msra.mxu0 %v640_v17 }
  0x43   :  { %589 = vmatprep.subr.bf16.mxu0 %v728_v0 }
  0x45   :  { %574 = vmatpush3.bf16.msra.mxu1 %v635_v12 }
  0x46   :  { %599 = vmatprep.subr.bf16.mxu1 %v728_v0  ;;  %590 = vmatpush3.bf16.msra.mxu0 %v641_v18 }
  0x47   :  { %591 = vmatprep.subr.bf16.mxu0 %v728_v0 }
  0x4a   :  { %592 = vmatpush3.bf16.msra.mxu0 %v642_v28 }
  0x4b   :  { %593 = vmatprep.subr.bf16.mxu0 %v728_v0 }
  0x4e   :  { %594 = vmatpush3.bf16.msra.mxu0 %v643_v29 }
 0x103   :  { %v124_v20 = vpop.f32.mrb[0].mxu0 }
 0x104   :  { %v125_v21 = vadd.f32 %v490_v19, %v124_v20  ;;  %v557_v22 = vpop.f32.mrb[1].mxu0 }
 0x105   :  { %v127_v23 = vpop.f32.mrb[2].mxu0 }
 0x106   :  { %v130_v24 = vpack.c.bf16 %v125_v21, %v125_v21  ;;  %v558_v25 = vpop.f32.mrb[3].mxu0 }
 0x108   :  { %v131_v26 = vmul.bf16 1009007652, %v130_v24 }
 0x10a   :  { %v132_v27 = vmax.bf16 %v131_v26, %v130_v24 }
 0x10c   :  { %576 = vmatmul.mubr.bf16.vlgmr.msra.gmra.mrb[0].mxu1 %v132_v27 }
 0x10d   :  { %615 = vmatprep.mubr.msk.bf16.mxu1 %vm729_vm0, %v728_v0  ;;  %600 = vmatpush3.bf16.msra.mxu1 %v644_v30 }
 0x10e   :  { %601 = vmatprep.subr.bf16.mxu1 %v728_v0 }
 0x111   :  { %602 = vmatpush3.bf16.msra.mxu1 %v645_v31 }
 0x112   :  { %603 = vmatprep.subr.bf16.mxu1 %v728_v0 }
 0x115   :  { %604 = vmatpush3.bf16.msra.mxu1 %v646_v32 }
 0x116   :  { %605 = vmatprep.subr.bf16.mxu1 %v728_v0 }
 0x119   :  { %606 = vmatpush3.bf16.msra.mxu1 %v647_v33 }
 0x11a   :  { %607 = vmatprep.subr.bf16.mxu1 %v728_v0 }
 0x11d   :  { %608 = vmatpush3.bf16.msra.mxu1 %v648_v34 }
 0x11e   :  { %609 = vmatprep.subr.bf16.mxu1 %v728_v0 }
 0x121   :  { %610 = vmatpush3.bf16.msra.mxu1 %v649_v35 }
 0x122   :  { %611 = vmatprep.subr.bf16.mxu1 %v728_v0 }
 0x125   :  { %612 = vmatpush3.bf16.msra.mxu1 %v650_v45 }
 0x126   :  { %613 = vmatprep.subr.bf16.mxu1 %v728_v0 }
 0x129   :  { %614 = vmatpush3.bf16.msra.mxu1 %v651_v46 }
 0x1df   :  { %v238_v37 = vpop.f32.mrb[0].mxu1 }
 0x1e0   :  { %v239_v38 = vadd.f32 %v494_v36, %v238_v37  ;;  %v577_v39 = vpop.f32.mrb[1].mxu1 }
 0x1e1   :  { %v241_v40 = vpop.f32.mrb[2].mxu1 }
 0x1e2   :  { %v244_v41 = vpack.c.bf16 %v239_v38, %v239_v38  ;;  %v578_v42 = vpop.f32.mrb[3].mxu1 }
 0x1e4   :  { %v245_v43 = vmul.bf16 1009007652, %v244_v41 }
 0x1e6   :  { %v246_v44 = vmax.bf16 %v245_v43, %v244_v41 }
 0x1e8   :  { %596 = vmatmul.mubr.bf16.vlgmr.msra.gmra.mrb[4].mxu0 %v246_v44 }
 0x2bb   :  { %v352_v48 = vpop.f32.mrb[4].mxu0 }
 0x2bc   :  { %v353_v49 = vadd.f32 %v503_v47, %v352_v48  ;;  %v597_v50 = vpop.f32.mrb[5].mxu0 }
 0x2bd   :  { %v355_v51 = vpop.f32.mrb[6].mxu0 }
 0x2be   :  { %v358_v52 = vpack.c.bf16 %v353_v49, %v353_v49  ;;  %v598_v53 = vpop.f32.mrb[7].mxu0 }
 0x2c0   :  { %v359_v54 = vmul.bf16 1009007652, %v358_v52 }
 0x2c2   :  { %v360_v55 = vmax.bf16 %v359_v54, %v358_v52 }
 0x2c4   :  { %616 = vmatmul.mubr.bf16.vlgmr.msra.gmra.mrb[4].mxu1 %v360_v55 }
 0x397   :  { %v466_v57 = vpop.f32.mrb[4].mxu1 }
 0x398   :  { %v467_v58 = vadd.f32 %v512_v56, %v466_v57  ;;  %v617_v59 = vpop.f32.mrb[5].mxu1 }
 0x399   :  { %v469_v60 = vpop.f32.mrb[6].mxu1 }
 0x39a   :  { %v618_v61 = vpop.f32.mrb[7].mxu1  ;;  %473 = vst.msk [vmem:[#allocation7] sm:$0xff] %vm472_vm2, %v467_v58 }
 0x39b   :  { %707 = shalt.err (!%p704_p6)
}
 0x39c   :  { %s708_s8 = scalar_lea.hbm %s933_s9, 128 }
 0x39d   :  { %p709_p7 = scmp.ne.s32.totalorder %s933_s9, %s708_s8  ;;  %p712_p8 = scmp.lt.u32.totalorder %s708_s8, %s933_s9 }
 0x39f   :  { %p714_p9 = pnand %p712_p8, %p709_p7 }
 0x3a1   :  { %717 = shalt.err (!%p714_p9)
}
 0x3a2   :  { %483 = dma.vmem_to_hbm [thread:$0]  %s481_s7, 128, %s933_s9, [#allocation4]  }
 0x3a3   :  { %722 = dma.done.wait [#allocation4], 128  }
 0x3a4   :  { %723 = vsyncadd [#allocation4], 4294967168 }
 0x3a5   :  { %487 = vsyncpa [#allocation3], 1 }
 0x3a6   :  { %488 = vsyncpa [#allocation6], 1 }
 0x3a7   :  { %489 = vsyncpa [#allocation4], 1 }

</bundles_post_ra>
